<compile_context>
chip_gen: v6e
topology: v6e:2x2x1
jax: 0.10.0
libtpu: 0.0.40
codegen_flags: <defaults>
</compile_context>

<pallas_src>
import jax
import jax.numpy as jnp
from jax.experimental import pallas as pl
from jax.experimental.pallas import tpu as pltpu


def _round_up(n, m):
    return ((n + m - 1) // m) * m


def _cdiv(a, b):
    return (a + b - 1) // b


def _choose_batch_tiling(B, batch_tile):
    """Pick (TB, B_pad, n_tiles) with:
         * TB a multiple of 128 (lane-dense blocks, unmasked stores),
         * B_pad = n_tiles * TB, waste beyond 128-rounding < (n_tiles-1)*128 columns,
         * n_tiles >= 2 whenever B > 128 (lets 'parallel' shard across v7x's 2 TCs).
    """
    batch_tile = max(128, _round_up(int(batch_tile), 128))
    m = _round_up(B, 128) // 128                 # batch size in 128-lane units
    n = max(_cdiv(m * 128, batch_tile), 2 if m >= 2 else 1)
    d = _cdiv(m, n)                              # 128-lane units per tile
    TB = 128 * d
    return TB, n * TB, n


def mlp_kernel(xT_ref, w1_ref, b1_ref, w2_ref, b2_ref, w3_ref, b3_ref, o_ref):
    """One batch tile of the MLP, batch on the lane axis.

    xT_ref : (F_pad, TB)  matmul dtype (f32/bf16) -- pipelined input tile
    w1_ref : (128, F_pad) matmul dtype            b1_ref : (128, 1) f32
    w2_ref : (64, 128)    matmul dtype            b2_ref : (64, 1)  f32
    w3_ref : (64, 1)      f32                     b3_ref : (1, 1)   f32 (SMEM)
    o_ref  : (1, TB)      f32 (lane-dense output slab)
    """
    mm_dtype = w1_ref.dtype

    # fc1 + ReLU: (128, F) @ (F, TB) -> (128, TB), f32 accumulate on the MXU.
    h1 = jnp.dot(w1_ref[...], xT_ref[...], preferred_element_type=jnp.float32)
    h1 = jnp.maximum(h1 + b1_ref[...], 0.0)

    # fc2 + ReLU: (64, 128) @ (128, TB) -> (64, TB).
    h2 = jnp.dot(w2_ref[...], h1.astype(mm_dtype), preferred_element_type=jnp.float32)
    h2 = jnp.maximum(h2 + b2_ref[...], 0.0)

    # fc3 (1 output unit): VPU multiply + sublane reduce instead of an N=1 MXU pass.
    out = jnp.sum(h2 * w3_ref[...], axis=0, keepdims=True) + b3_ref[0, 0]
    o_ref[...] = out.astype(o_ref.dtype)


def neural_network_forward(x, params, *, batch_tile=8192, use_bf16=False,
                           vmem_limit_bytes=32 * 1024 * 1024):
    """Forward pass matching the PyTorch module. x: (B, F) f32 -> (B, 1) f32.

    params (math layout): w1 (F,128), b1 (128,), w2 (128,64), b2 (64,), w3 (64,1), b3 (1,).
    use_bf16=True casts MXU operands to bf16 (f32 accumulate) for real-TPU throughput;
    default f32 keeps bit-near parity with the PyTorch reference and runs on any backend.
    """
    B, F = x.shape
    H1, H2 = 128, 64
    mm_dtype = jnp.bfloat16 if use_bf16 else jnp.float32

    # ---- wrapper-side layout plumbing ----
    F_pad = max(_round_up(F, 8), 8)                    # sublane-aligned feature dim
    TB, B_pad, n_tiles = _choose_batch_tiling(B, batch_tile)

    # Batch-on-lanes: single pad-of-transpose (+cast) so XLA emits one fusion.
    xT = jnp.pad(x.T, ((0, F_pad - F), (0, B_pad - B))).astype(mm_dtype)

    # Weights in (out, in) layout so the kernel computes W @ x^T.
    # TODO(synk): when F % 8 != 0 the spare zero-pad row of xT could carry a ones-row and
    # b1 could be folded into w1, saving the per-tile lane-broadcast bias add (tiny VPU win).
    w1 = jnp.pad(params["w1"].T.astype(mm_dtype), ((0, 0), (0, F_pad - F)))   # (128, F_pad)
    w2 = params["w2"].T.astype(mm_dtype)                                       # (64, 128)
    b1 = params["b1"].reshape(H1, 1).astype(jnp.float32)
    b2 = params["b2"].reshape(H2, 1).astype(jnp.float32)
    w3 = params["w3"].reshape(H2, 1).astype(jnp.float32)                       # VPU fc3 column
    b3 = params["b3"].reshape(1, 1).astype(jnp.float32)                        # scalar -> SMEM

    grid = (n_tiles,)

    flops = 2 * B_pad * (F_pad * H1 + H1 * H2 + H2)
    bytes_accessed = (
        xT.size * xT.dtype.itemsize
        + w1.size * w1.dtype.itemsize + w2.size * w2.dtype.itemsize
        + 4 * (b1.size + b2.size + w3.size + b3.size)
        + 4 * B_pad
    )

    out = pl.pallas_call(
        mlp_kernel,
        out_shape=jax.ShapeDtypeStruct((1, B_pad), jnp.float32),
        grid=grid,
        in_specs=[
            pl.BlockSpec((F_pad, TB), lambda i: (0, i)),          # x^T tile (double-buffered)
            pl.BlockSpec((H1, F_pad), lambda i: (0, 0)),          # w1 (resident)
            pl.BlockSpec((H1, 1), lambda i: (0, 0)),              # b1 (resident)
            pl.BlockSpec((H2, H1), lambda i: (0, 0)),             # w2 (resident)
            pl.BlockSpec((H2, 1), lambda i: (0, 0)),              # b2 (resident)
            pl.BlockSpec((H2, 1), lambda i: (0, 0)),              # w3 (resident)
            pl.BlockSpec(memory_space=pltpu.MemorySpace.SMEM),    # b3 scalar
        ],
        out_specs=pl.BlockSpec((1, TB), lambda i: (0, i)),        # lane-dense output slab
        compiler_params=pltpu.CompilerParams(
            dimension_semantics=("parallel",),
            vmem_limit_bytes=vmem_limit_bytes,
        ),
        cost_estimate=pl.CostEstimate(
            flops=flops, transcendentals=0, bytes_accessed=bytes_accessed),
    )(xT, w1, b1, w2, b2, w3, b3)

    # Back to the PyTorch (B, 1) layout; drop batch padding.
    return out[0, :B].reshape(B, 1)


def init_params(key, input_size):
    """Deterministic init mimicking nn.Linear default (uniform +-1/sqrt(fan_in))."""
    def linear_init(k, fan_in, fan_out):
        k_w, k_b = jax.random.split(k)
        bound = 1.0 / jnp.sqrt(fan_in)
        w = jax.random.uniform(k_w, (fan_in, fan_out), jnp.float32, -bound, bound)
        b = jax.random.uniform(k_b, (fan_out,), jnp.float32, -bound, bound)
        return w, b

    k1, k2, k3 = jax.random.split(key, 3)
    w1, b1 = linear_init(k1, input_size, 128)
    w2, b2 = linear_init(k2, 128, 64)
    w3, b3 = linear_init(k3, 64, 1)
    return {"w1": w1, "b1": b1, "w2": w2, "b2": b2, "w3": w3, "b3": b3}


if __name__ == "__main__":
    key = jax.random.PRNGKey(0)
    k_x, k_p = jax.random.split(key)

    batch = 8
    input_size = 16  # stands in for X_train.shape[1]

    x = jax.random.normal(k_x, (batch, input_size), dtype=jnp.float32)
    params = init_params(k_p, input_size)

    fwd = jax.jit(neural_network_forward)
    out = jax.block_until_ready(fwd(x, params))

    # Pure-JAX f32 reference (same math as the PyTorch module).
    h = jnp.maximum(x @ params["w1"] + params["b1"], 0.0)
    h = jnp.maximum(h @ params["w2"] + params["b2"], 0.0)
    ref = h @ params["w3"] + params["b3"]

    assert out.shape == (batch, 1)
    # f32 matmul path => tight tolerance (only accumulation-order differences remain).
    assert jnp.allclose(out, ref, atol=2e-3, rtol=2e-3), (out, ref)

    print("KERNEL_OK")
</pallas_src>

<mosaic_0001>
module attributes {stable_mosaic.version = 11 : i64} {
  func.func @mlp_kernel(%arg0: i32, %arg1: memref<16x128xf32, #tpu.memory_space<vmem>>, %arg2: memref<128x16xf32, #tpu.memory_space<vmem>>, %arg3: memref<128x1xf32, #tpu.memory_space<vmem>>, %arg4: memref<64x128xf32, #tpu.memory_space<vmem>>, %arg5: memref<64x1xf32, #tpu.memory_space<vmem>>, %arg6: memref<64x1xf32, #tpu.memory_space<vmem>>, %arg7: memref<1x1xf32, #tpu.memory_space<smem>>, %arg8: memref<1x128xf32, #tpu.memory_space<vmem>>) attributes {dimension_semantics = [#tpu.dimension_semantics<parallel>], iteration_bounds = array<i64: 1>, scalar_prefetch = 0 : i64, scratch_operands = 0 : i64, tpu.core_type = #tpu.core_type<tc>, window_params = [{transform_indices = @transform_0, window_bounds = array<i64: 16, 128>}, {pipeline_mode = #tpu.pipeline_mode<synchronous>, transform_indices = @transform_1, window_bounds = array<i64: 128, 16>}, {pipeline_mode = #tpu.pipeline_mode<synchronous>, transform_indices = @transform_2, window_bounds = array<i64: 128, 1>}, {pipeline_mode = #tpu.pipeline_mode<synchronous>, transform_indices = @transform_3, window_bounds = array<i64: 64, 128>}, {pipeline_mode = #tpu.pipeline_mode<synchronous>, transform_indices = @transform_4, window_bounds = array<i64: 64, 1>}, {pipeline_mode = #tpu.pipeline_mode<synchronous>, transform_indices = @transform_5, window_bounds = array<i64: 64, 1>}, {transform_indices = @transform_6, window_bounds = array<i64: 1, 1>}, {transform_indices = @transform_7, window_bounds = array<i64: 1, 128>}]} {
    %c0 = arith.constant 0 : index
    %c0_0 = arith.constant 0 : index
    %0 = vector.load %arg2[%c0, %c0_0] : memref<128x16xf32, #tpu.memory_space<vmem>>, vector<128x16xf32>
    %c0_1 = arith.constant 0 : index
    %c0_2 = arith.constant 0 : index
    %1 = vector.load %arg1[%c0_1, %c0_2] : memref<16x128xf32, #tpu.memory_space<vmem>>, vector<16x128xf32>
    %cst = arith.constant dense<0.000000e+00> : vector<128x128xf32>
    %2 = tpu.matmul %0, %1, %cst {dimension_numbers = #tpu.dot_dimension_numbers<[1], [0], [0], [1], [0, 0, 1, 1], [], []>} : vector<128x16xf32>, vector<16x128xf32>, vector<128x128xf32> -> vector<128x128xf32>
    %c0_3 = arith.constant 0 : index
    %c0_4 = arith.constant 0 : index
    %3 = vector.load %arg3[%c0_3, %c0_4] : memref<128x1xf32, #tpu.memory_space<vmem>>, vector<128x1xf32>
    %4 = vector.broadcast %3 : vector<128x1xf32> to vector<128x128xf32>
    %5 = arith.addf %2, %4 : vector<128x128xf32>
    %cst_5 = arith.constant 0.000000e+00 : f32
    %6 = vector.broadcast %cst_5 : f32 to vector<128x128xf32>
    %7 = arith.maximumf %5, %6 : vector<128x128xf32>
    %c0_6 = arith.constant 0 : index
    %c0_7 = arith.constant 0 : index
    %8 = vector.load %arg4[%c0_6, %c0_7] : memref<64x128xf32, #tpu.memory_space<vmem>>, vector<64x128xf32>
    %cst_8 = arith.constant dense<0.000000e+00> : vector<64x128xf32>
    %9 = tpu.matmul %8, %7, %cst_8 {dimension_numbers = #tpu.dot_dimension_numbers<[1], [0], [0], [1], [0, 0, 1, 1], [], []>} : vector<64x128xf32>, vector<128x128xf32>, vector<64x128xf32> -> vector<64x128xf32>
    %c0_9 = arith.constant 0 : index
    %c0_10 = arith.constant 0 : index
    %10 = vector.load %arg5[%c0_9, %c0_10] : memref<64x1xf32, #tpu.memory_space<vmem>>, vector<64x1xf32>
    %11 = vector.broadcast %10 : vector<64x1xf32> to vector<64x128xf32>
    %12 = arith.addf %9, %11 : vector<64x128xf32>
    %cst_11 = arith.constant 0.000000e+00 : f32
    %13 = vector.broadcast %cst_11 : f32 to vector<64x128xf32>
    %14 = arith.maximumf %12, %13 : vector<64x128xf32>
    %c0_12 = arith.constant 0 : index
    %c0_13 = arith.constant 0 : index
    %15 = vector.load %arg6[%c0_12, %c0_13] : memref<64x1xf32, #tpu.memory_space<vmem>>, vector<64x1xf32>
    %16 = vector.broadcast %15 : vector<64x1xf32> to vector<64x128xf32>
    %17 = arith.mulf %14, %16 : vector<64x128xf32>
    %cst_14 = arith.constant dense<0.000000e+00> : vector<128xf32>
    %18 = vector.multi_reduction <add>, %17, %cst_14 [0] : vector<64x128xf32> to vector<128xf32>
    %19 = vector.shape_cast %18 : vector<128xf32> to vector<1x128xf32>
    %c0_15 = arith.constant 0 : index
    %c0_16 = arith.constant 0 : index
    %20 = memref.load %arg7[%c0_15, %c0_16] : memref<1x1xf32, #tpu.memory_space<smem>>
    %21 = vector.broadcast %20 : f32 to vector<1x128xf32>
    %22 = arith.addf %19, %21 : vector<1x128xf32>
    %c0_17 = arith.constant 0 : index
    %c0_18 = arith.constant 0 : index
    %23 = vector.load %arg8[%c0_17, %c0_18] : memref<1x128xf32, #tpu.memory_space<vmem>>, vector<1x128xf32>
    tpu.vector_store %arg8[%c0_17, %c0_18], %22 {strides = array<i32>} : memref<1x128xf32, #tpu.memory_space<vmem>>, vector<1x128xf32>,
    return
  }
  func.func @transform_0(%arg0: i32) -> (i32, i32) {
    %c0_i32 = arith.constant 0 : i32
    %c0_i32_0 = arith.constant 0 : i32
    return %c0_i32, %arg0 : i32, i32
  }
  func.func @transform_1(%arg0: i32) -> (i32, i32) {
    %c0_i32 = arith.constant 0 : i32
    %c0_i32_0 = arith.constant 0 : i32
    %c0_i32_1 = arith.constant 0 : i32
    return %c0_i32, %c0_i32_0 : i32, i32
  }
  func.func @transform_2(%arg0: i32) -> (i32, i32) {
    %c0_i32 = arith.constant 0 : i32
    %c0_i32_0 = arith.constant 0 : i32
    %c0_i32_1 = arith.constant 0 : i32
    return %c0_i32, %c0_i32_0 : i32, i32
  }
  func.func @transform_3(%arg0: i32) -> (i32, i32) {
    %c0_i32 = arith.constant 0 : i32
    %c0_i32_0 = arith.constant 0 : i32
    %c0_i32_1 = arith.constant 0 : i32
    return %c0_i32, %c0_i32_0 : i32, i32
  }
  func.func @transform_4(%arg0: i32) -> (i32, i32) {
    %c0_i32 = arith.constant 0 : i32
    %c0_i32_0 = arith.constant 0 : i32
    %c0_i32_1 = arith.constant 0 : i32
    return %c0_i32, %c0_i32_0 : i32, i32
  }
  func.func @transform_5(%arg0: i32) -> (i32, i32) {
    %c0_i32 = arith.constant 0 : i32
    %c0_i32_0 = arith.constant 0 : i32
    %c0_i32_1 = arith.constant 0 : i32
    return %c0_i32, %c0_i32_0 : i32, i32
  }
  func.func @transform_6(%arg0: i32) -> (i32, i32) {
    %c0_i32 = arith.constant 0 : i32
    %c0_i32_0 = arith.constant 0 : i32
    %c0_i32_1 = arith.constant 0 : i32
    return %c0_i32, %c0_i32_0 : i32, i32
  }
  func.func @transform_7(%arg0: i32) -> (i32, i32) {
    %c0_i32 = arith.constant 0 : i32
    %c0_i32_0 = arith.constant 0 : i32
    return %c0_i32, %arg0 : i32, i32
  }
}

</mosaic_0001>

<bundles_post_ra>
// kernel: neural_network_forward.1
= control target key start
LH: loop header
LB: loop body
LE: loop exit
PB: predicated region body
PF: predicated region fallthrough
CT: control target
= control target key end

     0   :  { %vm141_vm0 = vcmask 130048   ;;  %v762_v3 = vmov 0   ;;  %s1017_s0 = inlined_call_operand.vmem [shape: f32[16,128], index: 0, kind: input, shape index: {}]   ;;  %s1018_s1 = inlined_call_operand.vmem [shape: f32[128,16], index: 1, kind: input, shape index: {}]   ;;  %s1019_s2 = inlined_call_operand.vmem [shape: f32[128,1], index: 2, kind: input, shape index: {}]   ;;  %s1020_s4 = inlined_call_operand.vmem [shape: f32[64,1], index: 4, kind: input, shape index: {}]   ;;  %s1021_s5 = inlined_call_operand.vmem [shape: f32[64,1], index: 5, kind: input, shape index: {}]   ;;  %s1022_s3 = inlined_call_operand.vmem [shape: f32[64,128], index: 3, kind: input, shape index: {}]   ;;  %s1023_s6 = inlined_call_operand.<no memory space> [shape: f32[1,1], index: 6, kind: input, shape index: {}]   ;;  %s1024_s7 = inlined_call_operand.vmem [shape: f32[1,128], index: 7, kind: output, shape index: {}]  }
   0x1   :  { %v44_v0 = vld [vmem:[%s1017_s0 + $0x8] sm:$0xff]  ;;  %v43_v1 = vld [vmem:[%s1017_s0] sm:$0xff]  ;;  %760 = vset.pattern.permute.xlu0 %v762_v3  ;;  %761 = vset.pattern.permute.xlu1 %v762_v3  ;;  %v29_v5 = vld [vmem:[%s1018_s1 + $0x10] sm:$0xff] }
   0x2   :  { %v27_v2 = vld [vmem:[%s1018_s1] sm:$0xff]  ;;  %655 = vmatprep.subr.mxu0 %v44_v0  ;;  %v28_v4 = vld [vmem:[%s1018_s1 + $0x8] sm:$0xff]  ;;  %v30_v6 = vld [vmem:[%s1018_s1 + $0x18] sm:$0xff] }
   0x3   :  { %659 = vmatprep.mubr.msk.f32.mxu0 %vm141_vm0, %v27_v2  ;;  %656 = vmatpush3.msra.mxu0 %v44_v0  ;;  %v60_v7 = vld [vmem:[%s1019_s2 + $0x78] sm:$0xff]  ;;  %v58_v8 = vld [vmem:[%s1019_s2 + $0x68] sm:$0xff]  ;;  %v31_v9 = vld [vmem:[%s1018_s1 + $0x20] sm:$0xff] }
   0x4   :  { %657 = vmatprep.subr.mxu0 %v43_v1  ;;  %138 = vperm.xlu0 %760, %v60_v7   ;;  %v59_v10 = vld [vmem:[%s1019_s2 + $0x70] sm:$0xff]  ;;  %v57_v11 = vld [vmem:[%s1019_s2 + $0x60] sm:$0xff]  ;;  %v32_v12 = vld [vmem:[%s1018_s1 + $0x28] sm:$0xff] }
   0x5   :  { %658 = vmatpush3.msra.mxu0 %v43_v1  ;;  %128 = vperm.xlu1 %761, %v58_v8   ;;  %v33_v13 = vld [vmem:[%s1018_s1 + $0x30] sm:$0xff]  ;;  %v56_v14 = vld [vmem:[%s1019_s2 + $0x58] sm:$0xff]  ;;  %v35_v17 = vld [vmem:[%s1018_s1 + $0x40] sm:$0xff] }
   0x6   :  { %660 = vmatmul.mubr.msk.f32.vlgmr.msra.gmra.mxu0 %vm141_vm0, %v28_v4  ;;  %v55_v15 = vld [vmem:[%s1019_s2 + $0x50] sm:$0xff]  ;;  %v34_v16 = vld [vmem:[%s1018_s1 + $0x38] sm:$0xff]  ;;  %v54_v18 = vld [vmem:[%s1019_s2 + $0x48] sm:$0xff] }
   0x7   :  { %662 = vmatprep.mubr.msk.f32.mxu0 %vm141_vm0, %v29_v5  ;;  %v53_v19 = vld [vmem:[%s1019_s2 + $0x40] sm:$0xff]  ;;  %v36_v20 = vld [vmem:[%s1018_s1 + $0x48] sm:$0xff]  ;;  %v37_v21 = vld [vmem:[%s1018_s1 + $0x50] sm:$0xff] }
   0x8   :  { %133 = vperm.xlu0 %760, %v59_v10   ;;  %v52_v22 = vld [vmem:[%s1019_s2 + $0x38] sm:$0xff]  ;;  %v51_v23 = vld [vmem:[%s1019_s2 + $0x30] sm:$0xff]  ;;  %v39_v25 = vld [vmem:[%s1018_s1 + $0x60] sm:$0xff] }
   0x9   :  { %123 = vperm.xlu1 %761, %v57_v11   ;;  %v38_v24 = vld [vmem:[%s1018_s1 + $0x58] sm:$0xff]  ;;  %v50_v26 = vld [vmem:[%s1019_s2 + $0x28] sm:$0xff]  ;;  %v49_v27 = vld [vmem:[%s1019_s2 + $0x20] sm:$0xff] }
   0xa   :  { %663 = vmatmul.mubr.msk.f32.gmra.mxu0 %vm141_vm0, %v30_v6  ;;  %v40_v28 = vld [vmem:[%s1018_s1 + $0x68] sm:$0xff]  ;;  %v41_v29 = vld [vmem:[%s1018_s1 + $0x70] sm:$0xff]  ;;  %v48_v30 = vld [vmem:[%s1019_s2 + $0x18] sm:$0xff] }
   0xb   :  { %665 = vmatprep.mubr.msk.f32.mxu0 %vm141_vm0, %v31_v9  ;;  %v47_v31 = vld [vmem:[%s1019_s2 + $0x10] sm:$0xff]  ;;  %v42_v32 = vld [vmem:[%s1018_s1 + $0x78] sm:$0xff]  ;;  %v46_v33 = vld [vmem:[%s1019_s2 + $0x8] sm:$0xff] }
   0xc   :  { %118 = vperm.xlu0 %760, %v56_v14   ;;  %v45_v34 = vld [vmem:[%s1019_s2] sm:$0xff]  ;;  %v360_v36 = vld [vmem:[%s1020_s4 + $0x8] sm:$0xff]  ;;  %v361_v37 = vld [vmem:[%s1020_s4 + $0x10] sm:$0xff] }
   0xd   :  { %113 = vperm.xlu1 %761, %v55_v15   ;;  %v359_v35 = vld [vmem:[%s1020_s4] sm:$0xff]  ;;  %v362_v38 = vld [vmem:[%s1020_s4 + $0x18] sm:$0xff]  ;;  %v521_v40 = vld [vmem:[%s1021_s5 + $0x8] sm:$0xff] }
   0xe   :  { %666 = vmatmul.mubr.msk.f32.gmra.mxu0 %vm141_vm0, %v32_v12  ;;  %v520_v39 = vld [vmem:[%s1021_s5] sm:$0xff]  ;;  %v522_v42 = vld [vmem:[%s1021_s5 + $0x10] sm:$0xff]  ;;  %v364_v43 = vld [vmem:[%s1020_s4 + $0x28] sm:$0xff] }
   0xf   :  { %668 = vmatprep.mubr.msk.f32.mxu0 %vm141_vm0, %v33_v13  ;;  %v363_v41 = vld [vmem:[%s1020_s4 + $0x20] sm:$0xff]  ;;  %v523_v44 = vld [vmem:[%s1021_s5 + $0x18] sm:$0xff]  ;;  %v365_v45 = vld [vmem:[%s1020_s4 + $0x30] sm:$0xff] }
  0x10   :  { %108 = vperm.xlu0 %760, %v54_v18   ;;  %v524_v46 = vld [vmem:[%s1021_s5 + $0x20] sm:$0xff]  ;;  %v366_v47 = vld [vmem:[%s1020_s4 + $0x38] sm:$0xff]  ;;  %v525_v48 = vld [vmem:[%s1021_s5 + $0x28] sm:$0xff] }
  0x11   :  { %103 = vperm.xlu1 %761, %v53_v19   ;;  %v526_v49 = vld [vmem:[%s1021_s5 + $0x30] sm:$0xff]  ;;  %v527_v50 = vld [vmem:[%s1021_s5 + $0x38] sm:$0xff]  ;;  %v351_v51 = vld [vmem:[%s1022_s3] sm:$0xff] }
  0x12   :  { %669 = vmatmul.mubr.msk.f32.gmra.mxu0 %vm141_vm0, %v34_v16  ;;  %v353_v52 = vld [vmem:[%s1022_s3 + $0x10] sm:$0xff] }
  0x13   :  { %671 = vmatprep.mubr.msk.f32.mxu0 %vm141_vm0, %v35_v17  ;;  %718 = vmatprep.mubr.f32.mxu1 %v353_v52 }
  0x14   :  { %98 = vperm.xlu0 %760, %v52_v22  }
  0x15   :  { %93 = vperm.xlu1 %761, %v51_v23  }
  0x16   :  { %672 = vmatmul.mubr.msk.f32.gmra.mxu0 %vm141_vm0, %v36_v20 }
  0x17   :  { %674 = vmatprep.mubr.msk.f32.mxu0 %vm141_vm0, %v37_v21 }
  0x18   :  { %88 = vperm.xlu0 %760, %v50_v26  }
  0x19   :  { %83 = vperm.xlu1 %761, %v49_v27  }
  0x1a   :  { %675 = vmatmul.mubr.msk.f32.gmra.mxu0 %vm141_vm0, %v38_v24 }
  0x1b   :  { %677 = vmatprep.mubr.msk.f32.mxu0 %vm141_vm0, %v39_v25 }
  0x1c   :  { %78 = vperm.xlu0 %760, %v48_v30  }
  0x1d   :  { %73 = vperm.xlu1 %761, %v47_v31  }
  0x1e   :  { %678 = vmatmul.mubr.msk.f32.gmra.mxu0 %vm141_vm0, %v40_v28 }
  0x1f   :  { %680 = vmatprep.mubr.msk.f32.mxu0 %vm141_vm0, %v41_v29 }
  0x20   :  { %68 = vperm.xlu0 %760, %v46_v33  }
  0x21   :  { %63 = vperm.xlu1 %761, %v45_v34  }
  0x22   :  { %681 = vmatmul.mubr.msk.f32.gmra.mxu0 %vm141_vm0, %v42_v32 }
  0x23   :  { %715 = vmatprep.mubr.f32.mxu0 %v351_v51 }
  0x24   :  { %369 = vperm.xlu0 %760, %v359_v35  }
  0x25   :  { %374 = vperm.xlu1 %761, %v360_v36  }
  0x28   :  { %379 = vperm.xlu0 %760, %v361_v37  }
  0x29   :  { %384 = vperm.xlu1 %761, %v362_v38  }
  0x2c   :  { %530 = vperm.xlu0 %760, %v520_v39  }
  0x2d   :  { %535 = vperm.xlu1 %761, %v521_v40  }
  0x30   :  { %389 = vperm.xlu0 %760, %v363_v41  }
  0x31   :  { %540 = vperm.xlu1 %761, %v522_v42  }
  0x34   :  { %394 = vperm.xlu0 %760, %v364_v43  }
  0x35   :  { %545 = vperm.xlu1 %761, %v523_v44  }
  0x38   :  { %399 = vperm.xlu0 %760, %v365_v45  }
  0x39   :  { %550 = vperm.xlu1 %761, %v524_v46  }
  0x3c   :  { %404 = vperm.xlu0 %760, %v366_v47  }
  0x3d   :  { %555 = vperm.xlu1 %761, %v525_v48  }
  0x40   :  { %560 = vperm.xlu0 %760, %v526_v49  }
  0x41   :  { %565 = vperm.xlu1 %761, %v527_v50  }
  0x7f   :  { %v139_v59 = vpop.permute.xlu0 %138 }
  0x80   :  { %v129_v61 = vpop.permute.xlu1 %128 }
  0x83   :  { %v134_v0 = vpop.permute.xlu0 %133 }
  0x84   :  { %v124_v2 = vpop.permute.xlu1 %123 }
  0x87   :  { %v119_v5 = vpop.permute.xlu0 %118 }
  0x88   :  { %v114_v7 = vpop.permute.xlu1 %113 }
  0x8b   :  { %v109_v11 = vpop.permute.xlu0 %108 }
  0x8c   :  { %v104_v16 = vpop.permute.xlu1 %103 }
  0x8f   :  { %v99_v21 = vpop.permute.xlu0 %98 }
  0x90   :  { %v94_v24 = vpop.permute.xlu1 %93 }
  0x93   :  { %v89_v29 = vpop.permute.xlu0 %88 }
  0x94   :  { %v84_v32 = vpop.permute.xlu1 %83 }
  0x97   :  { %v79_v37 = vpop.permute.xlu0 %78 }
  0x98   :  { %v74_v40 = vpop.permute.xlu1 %73 }
  0x9b   :  { %v69_v45 = vpop.permute.xlu0 %68 }
  0x9c   :  { %v64_v48 = vpop.permute.xlu1 %63 }
  0xc6   :  { %v975_v53 = vpop.f32.mrf.mxu0 }
  0xc7   :  { %v262_v46 = vadd.f32 %v975_v53, %v69_v45  ;;  %v352_v53 = vld [vmem:[%s1022_s3 + $0x8] sm:$0xff] }
  0xc8   :  { %v977_v54 = vpop.f32.mrf.mxu0 }
  0xc9   :  { %v257_v49 = vadd.f32 %v977_v54, %v64_v48  ;;  %v336_v51 = vmax.f32 %v262_v46, 0.0  ;;  %v354_v54 = vld [vmem:[%s1022_s3 + $0x18] sm:$0xff] }
  0xca   :  { %v979_v55 = vpop.f32.mrf.mxu0 }
  0xcb   :  { %v272_v41 = vadd.f32 %v979_v55, %v79_v37  ;;  %v335_v52 = vmax.f32 %v257_v49, 0.0  ;;  %v355_v55 = vld [vmem:[%s1022_s3 + $0x20] sm:$0xff] }
  0xcc   :  { %v981_v56 = vpop.f32.mrf.mxu0 }
  0xcd   :  { %v267_v43 = vadd.f32 %v981_v56, %v74_v40  ;;  %v338_v47 = vmax.f32 %v272_v41, 0.0  ;;  %v356_v56 = vld [vmem:[%s1022_s3 + $0x28] sm:$0xff] }
  0xce   :  { %v983_v57 = vpop.f32.mrf.mxu0 }
  0xcf   :  { %v282_v35 = vadd.f32 %v983_v57, %v89_v29  ;;  %v337_v50 = vmax.f32 %v267_v43, 0.0  ;;  %v357_v57 = vld [vmem:[%s1022_s3 + $0x30] sm:$0xff] }
  0xd0   :  { %v985_v58 = vpop.f32.mrf.mxu0 }
  0xd1   :  { %v277_v38 = vadd.f32 %v985_v58, %v84_v32  ;;  %v340_v42 = vmax.f32 %v282_v35, 0.0  ;;  %v358_v58 = vld [vmem:[%s1022_s3 + $0x38] sm:$0xff] }
  0xd2   :  { %v670_v60 = vpop.f32.mrf.mxu0 }
  0xd3   :  { %v292_v30 = vadd.f32 %v670_v60, %v99_v21  ;;  %v339_v44 = vmax.f32 %v277_v38, 0.0  ;;  %v375_v60 = vpop.permute.xlu1 %374 }
  0xd4   :  { %v286_v62 = vpop.f32.mrf.mxu0 }
  0xd5   :  { %v287_v33 = vadd.f32 %v286_v62, %v94_v24  ;;  %v342_v36 = vmax.f32 %v292_v30, 0.0 }
  0xd6   :  { %v673_v63 = vpop.f32.mrf.mxu0 }
  0xd7   :  { %v302_v25 = vadd.f32 %v673_v63, %v109_v11  ;;  %v341_v39 = vmax.f32 %v287_v33, 0.0  ;;  %v385_v62 = vpop.permute.xlu1 %384 }
  0xd8   :  { %v296_v1 = vpop.f32.mrf.mxu0 }
  0xd9   :  { %v297_v27 = vadd.f32 %v296_v1, %v104_v16  ;;  %v344_v31 = vmax.f32 %v302_v25, 0.0 }
  0xda   :  { %v676_v3 = vpop.f32.mrf.mxu0 }
  0xdb   :  { %v312_v19 = vadd.f32 %v676_v3, %v119_v5  ;;  %v343_v34 = vmax.f32 %v297_v27, 0.0 }
  0xdc   :  { %v306_v4 = vpop.f32.mrf.mxu0 }
  0xdd   :  { %v307_v22 = vadd.f32 %v306_v4, %v114_v7  ;;  %v346_v26 = vmax.f32 %v312_v19, 0.0 }
  0xde   :  { %v679_v6 = vpop.f32.mrf.mxu0 }
  0xdf   :  { %v322_v13 = vadd.f32 %v679_v6, %v129_v61  ;;  %v345_v28 = vmax.f32 %v307_v22, 0.0 }
  0xe0   :  { %v316_v8 = vpop.f32.mrf.mxu0 }
  0xe1   :  { %v317_v17 = vadd.f32 %v316_v8, %v124_v2  ;;  %v348_v20 = vmax.f32 %v322_v13, 0.0 }
  0xe2   :  { %v682_v9 = vpop.f32.mrf.mxu0 }
  0xe3   :  { %v332_v10 = vadd.f32 %v682_v9, %v139_v59  ;;  %v347_v23 = vmax.f32 %v317_v17, 0.0  ;;  %v370_v59 = vpop.permute.xlu0 %369 }
  0xe4   :  { %v326_v12 = vpop.f32.mrf.mxu0 }
  0xe5   :  { %v350_v14 = vmax.f32 %v332_v10, 0.0  ;;  %v327_v15 = vadd.f32 %v326_v12, %v134_v0  ;;  %v536_v0 = vpop.permute.xlu1 %535 }
  0xe7   :  { %v349_v18 = vmax.f32 %v327_v15, 0.0  ;;  %683 = vmatprep.subr.mxu0 %v350_v14  ;;  %727 = vmatprep.subr.mxu1 %v350_v14  ;;  %v380_v61 = vpop.permute.xlu0 %379 }
  0xe8   :  { %684 = vmatpush3.msra.mxu0 %v350_v14  ;;  %743 = vmatpush3.msra.mxu1 %v350_v14 }
  0xe9   :  { %685 = vmatprep.subr.mxu0 %v349_v18  ;;  %728 = vmatprep.subr.mxu1 %v349_v18  ;;  %v541_v2 = vpop.permute.xlu1 %540 }
  0xea   :  { %686 = vmatpush3.msra.mxu0 %v349_v18  ;;  %744 = vmatpush3.msra.mxu1 %v349_v18 }
  0xeb   :  { %687 = vmatprep.subr.mxu0 %v348_v20  ;;  %729 = vmatprep.subr.mxu1 %v348_v20  ;;  %v531_v63 = vpop.permute.xlu0 %530 }
  0xec   :  { %688 = vmatpush3.msra.mxu0 %v348_v20  ;;  %745 = vmatpush3.msra.mxu1 %v348_v20 }
  0xed   :  { %689 = vmatprep.subr.mxu0 %v347_v23  ;;  %730 = vmatprep.subr.mxu1 %v347_v23  ;;  %v546_v4 = vpop.permute.xlu1 %545 }
  0xee   :  { %690 = vmatpush3.msra.mxu0 %v347_v23  ;;  %746 = vmatpush3.msra.mxu1 %v347_v23 }
  0xef   :  { %691 = vmatprep.subr.mxu0 %v346_v26  ;;  %731 = vmatprep.subr.mxu1 %v346_v26  ;;  %v390_v1 = vpop.permute.xlu0 %389 }
  0xf0   :  { %692 = vmatpush3.msra.mxu0 %v346_v26  ;;  %747 = vmatpush3.msra.mxu1 %v346_v26 }
  0xf1   :  { %693 = vmatprep.subr.mxu0 %v345_v28  ;;  %732 = vmatprep.subr.mxu1 %v345_v28  ;;  %v551_v18 = vpop.permute.xlu1 %550 }
  0xf2   :  { %694 = vmatpush3.msra.mxu0 %v345_v28  ;;  %748 = vmatpush3.msra.mxu1 %v345_v28 }
  0xf3   :  { %695 = vmatprep.subr.mxu0 %v344_v31  ;;  %733 = vmatprep.subr.mxu1 %v344_v31  ;;  %v395_v3 = vpop.permute.xlu0 %394 }
  0xf4   :  { %696 = vmatpush3.msra.mxu0 %v344_v31  ;;  %749 = vmatpush3.msra.mxu1 %v344_v31 }
  0xf5   :  { %697 = vmatprep.subr.mxu0 %v343_v34  ;;  %734 = vmatprep.subr.mxu1 %v343_v34 }
  0xf6   :  { %698 = vmatpush3.msra.mxu0 %v343_v34  ;;  %750 = vmatpush3.msra.mxu1 %v343_v34 }
  0xf7   :  { %699 = vmatprep.subr.mxu0 %v342_v36  ;;  %735 = vmatprep.subr.mxu1 %v342_v36  ;;  %v400_v14 = vpop.permute.xlu0 %399 }
  0xf8   :  { %700 = vmatpush3.msra.mxu0 %v342_v36  ;;  %751 = vmatpush3.msra.mxu1 %v342_v36  ;;  %v556_v36 = vpop.permute.xlu1 %555 }
  0xf9   :  { %701 = vmatprep.subr.mxu0 %v341_v39  ;;  %736 = vmatprep.subr.mxu1 %v341_v39 }
  0xfa   :  { %702 = vmatpush3.msra.mxu0 %v341_v39  ;;  %752 = vmatpush3.msra.mxu1 %v341_v39 }
  0xfb   :  { %703 = vmatprep.subr.mxu0 %v340_v42  ;;  %737 = vmatprep.subr.mxu1 %v340_v42  ;;  %v405_v29 = vpop.permute.xlu0 %404 }
  0xfc   :  { %704 = vmatpush3.msra.mxu0 %v340_v42  ;;  %753 = vmatpush3.msra.mxu1 %v340_v42  ;;  %v566_v46 = vpop.permute.xlu1 %565 }
  0xfd   :  { %705 = vmatprep.subr.mxu0 %v339_v44  ;;  %738 = vmatprep.subr.mxu1 %v339_v44 }
  0xfe   :  { %706 = vmatpush3.msra.mxu0 %v339_v44  ;;  %754 = vmatpush3.msra.mxu1 %v339_v44 }
  0xff   :  { %707 = vmatprep.subr.mxu0 %v338_v47  ;;  %739 = vmatprep.subr.mxu1 %v338_v47  ;;  %v561_v43 = vpop.permute.xlu0 %560 }
 0x100   :  { %708 = vmatpush3.msra.mxu0 %v338_v47  ;;  %755 = vmatpush3.msra.mxu1 %v338_v47 }
 0x101   :  { %709 = vmatprep.subr.mxu0 %v337_v50  ;;  %740 = vmatprep.subr.mxu1 %v337_v50 }
 0x102   :  { %710 = vmatpush3.msra.mxu0 %v337_v50  ;;  %756 = vmatpush3.msra.mxu1 %v337_v50 }
 0x103   :  { %711 = vmatprep.subr.mxu0 %v336_v51  ;;  %741 = vmatprep.subr.mxu1 %v336_v51 }
 0x104   :  { %712 = vmatpush3.msra.mxu0 %v336_v51  ;;  %757 = vmatpush3.msra.mxu1 %v336_v51 }
 0x105   :  { %713 = vmatprep.subr.mxu0 %v335_v52  ;;  %742 = vmatprep.subr.mxu1 %v335_v52 }
 0x106   :  { %714 = vmatpush3.msra.mxu0 %v335_v52  ;;  %758 = vmatpush3.msra.mxu1 %v335_v52 }
 0x107   :  { %716 = vmatmul.mubr.f32.vlgmr.msra.gmra.mxu0 %v352_v53  ;;  %719 = vmatmul.mubr.f32.vlgmr.msra.gmra.mxu1 %v354_v54 }
 0x108   :  { %721 = vmatprep.mubr.f32.mxu1 %v355_v55  ;;  %v590_v55 = vstv %s1023_s6 }
 0x10b   :  { %722 = vmatmul.mubr.f32.gmra.mxu1 %v356_v56 }
 0x10c   :  { %724 = vmatprep.mubr.f32.mxu1 %v357_v57 }
 0x10f   :  { %725 = vmatmul.mubr.f32.gmra.mxu1 %v358_v58 }
 0x1c7   :  { %v717_v5 = vpop.f32.mrf.mxu0  ;;  %v720_v6 = vpop.f32.mrf.mxu1 }
 0x1c8   :  { %v479_v7 = vadd.f32 %v717_v5, %v375_v60  ;;  %v489_v8 = vadd.f32 %v720_v6, %v385_v62 }
 0x1c9   :  { %v473_v9 = vpop.f32.mrf.mxu0  ;;  %v483_v10 = vpop.f32.mrf.mxu1 }
 0x1ca   :  { %v513_v11 = vmax.f32 %v479_v7, 0.0  ;;  %v474_v12 = vadd.f32 %v473_v9, %v370_v59  ;;  %v484_v13 = vadd.f32 %v483_v10, %v380_v61  ;;  %v515_v19 = vmax.f32 %v489_v8, 0.0 }
 0x1cb   :  { %v723_v15 = vpop.f32.mrf.mxu1 }
 0x1cc   :  { %v512_v16 = vmax.f32 %v474_v12, 0.0  ;;  %v514_v17 = vmax.f32 %v484_v13, 0.0  ;;  %v569_v21 = vmul.f32 %v536_v0, %v513_v11  ;;  %v499_v23 = vadd.f32 %v723_v15, %v395_v3 }
 0x1cd   :  { %v493_v20 = vpop.f32.mrf.mxu1  ;;  %v571_v30 = vmul.f32 %v546_v4, %v515_v19 }
 0x1ce   :  { %v568_v22 = vmul.f32 %v531_v63, %v512_v16  ;;  %v494_v24 = vadd.f32 %v493_v20, %v390_v1  ;;  %v570_v27 = vmul.f32 %v541_v2, %v514_v17  ;;  %v517_v33 = vmax.f32 %v499_v23, 0.0 }
 0x1cf   :  { %v726_v25 = vpop.f32.mrf.mxu1 }
 0x1d0   :  { %v576_v26 = vadd.f32 %v569_v21, %v568_v22  ;;  %v516_v28 = vmax.f32 %v494_v24, 0.0  ;;  %v509_v34 = vadd.f32 %v726_v25, %v405_v29  ;;  %v573_v40 = vmul.f32 %v556_v36, %v517_v33 }
 0x1d1   :  { %v503_v31 = vpop.f32.mrf.mxu1 }
 0x1d2   :  { %v577_v32 = vadd.f32 %v576_v26, %v570_v27  ;;  %v504_v35 = vadd.f32 %v503_v31, %v400_v14  ;;  %v572_v37 = vmul.f32 %v551_v18, %v516_v28  ;;  %v519_v42 = vmax.f32 %v509_v34, 0.0 }
 0x1d4   :  { %v578_v38 = vadd.f32 %v577_v32, %v571_v30  ;;  %v518_v39 = vmax.f32 %v504_v35, 0.0  ;;  %v575_v47 = vmul.f32 %v566_v46, %v519_v42 }
 0x1d6   :  { %v579_v41 = vadd.f32 %v578_v38, %v572_v37  ;;  %v574_v44 = vmul.f32 %v561_v43, %v518_v39 }
 0x1d8   :  { %v580_v45 = vadd.f32 %v579_v41, %v573_v40 }
 0x1da   :  { %v581_v48 = vadd.f32 %v580_v45, %v574_v44 }
 0x1dc   :  { %v582_v49 = vadd.f32 %v581_v48, %v575_v47 }
 0x1de   :  { %v583_v50 = vrot.slane %v582_v49, 4 }
 0x1e0   :  { %v584_v51 = vadd.f32 %v583_v50, %v582_v49 }
 0x1e2   :  { %v585_v52 = vrot.slane %v584_v51, 2 }
 0x1e4   :  { %v586_v53 = vadd.f32 %v585_v52, %v584_v51 }
 0x1e6   :  { %v587_v54 = vrot.slane %v586_v53, 1 }
 0x1e8   :  { %v588_v56 = vadd.f32 %v587_v54, %v586_v53 }
 0x1ea   :  { %v591_v57 = vadd.f32 %v590_v55, %v588_v56 }
 0x1ec   :  { %592 = vst [vmem:[%s1024_s7] sm:$0x1] %v591_v57 }

</bundles_post_ra>
